<compile_context>
chip_gen: v7x
topology: tpu7x:2x2x1
jax: 0.10.0
libtpu: 0.0.40
codegen_flags: <defaults>
</compile_context>

<pallas_src>
import jax
import jax.numpy as jnp
from jax.experimental import pallas as pl
from jax.experimental.pallas import tpu as pltpu


def _round_up(x: int, m: int) -> int:
    return (x + m - 1) // m * m


def _ranker_kernel(c1_ref, c2_ref, ds_ref, w1_ref, w2_ref, out_ref):
    # Elementwise work on the VPU, cross-lane reduce on the XLU, tanh on the EUP.
    diff = c1_ref[...].astype(jnp.float32) - c2_ref[...].astype(jnp.float32)
    ds = ds_ref[...].astype(jnp.float32)
    w1 = w1_ref[...].astype(jnp.float32)  # (1, d_cand) -> broadcast over tile rows
    w2 = w2_ref[...].astype(jnp.float32)  # (1, d_data)
    s = (jnp.sum(diff * w1, axis=-1, keepdims=True)
         + jnp.sum(ds * w2, axis=-1, keepdims=True))
    out_ref[...] = jnp.tanh(s * 0.5).astype(out_ref.dtype)


def fusion_direct_ranker(candidate_1, candidate_2, dataset, weight, *, block_b=1024):
    """weight: (1, d_cand + d_data), as in nn.Linear(in_dim, 1, bias=False)."""
    B, d_cand = candidate_1.shape
    B2, d_data = dataset.shape
    assert B2 == B and candidate_2.shape == (B, d_cand)
    assert weight.shape == (1, d_cand + d_data)

    # Split W = [W1 | W2]; keep rows lane-major (no transpose needed for the
    # VPU multiply + lane-reduction formulation).
    w1 = weight[:, :d_cand]
    w2 = weight[:, d_cand:]

    # Batch tile: multiple of 8 sublanes, large enough to amortize the ~0.35us
    # per-grid-step overhead, but never larger than the (padded) batch.
    bt = min(_round_up(block_b, 8), _round_up(B, 8))
    Bp = _round_up(B, bt)
    if Bp != B:
        pad = ((0, Bp - B), (0, 0))
        candidate_1 = jnp.pad(candidate_1, pad)
        candidate_2 = jnp.pad(candidate_2, pad)
        dataset = jnp.pad(dataset, pad)
    grid = (Bp // bt,)

    itemsize = jnp.dtype(candidate_1.dtype).itemsize
    # Double-buffered input tiles + output tiles + resident weights, with headroom.
    vmem_bytes = (2 * bt * (2 * d_cand + d_data) * itemsize
                  + 2 * bt * 4
                  + (d_cand + d_data) * 4)
    vmem_limit = int(min(max(4 * vmem_bytes, 4 << 20), 32 << 20))

    cost = pl.CostEstimate(
        flops=int(B * (3 * d_cand + 2 * d_data) + B),
        transcendentals=int(B),
        bytes_accessed=int((2 * d_cand + d_data) * B * itemsize
                           + (d_cand + d_data) * 4 + B * 4),
    )

    out = pl.pallas_call(
        _ranker_kernel,
        out_shape=jax.ShapeDtypeStruct((Bp, 1), jnp.float32),
        grid=grid,
        in_specs=[
            pl.BlockSpec((bt, d_cand), lambda i: (i, 0)),
            pl.BlockSpec((bt, d_cand), lambda i: (i, 0)),
            pl.BlockSpec((bt, d_data), lambda i: (i, 0)),
            pl.BlockSpec((1, d_cand), lambda i: (0, 0)),  # weights: VMEM-resident
            pl.BlockSpec((1, d_data), lambda i: (0, 0)),
        ],
        out_specs=pl.BlockSpec((bt, 1), lambda i: (i, 0)),
        compiler_params=pltpu.CompilerParams(
            dimension_semantics=("parallel",),
            vmem_limit_bytes=vmem_limit,
        ),
        cost_estimate=cost,
    )(candidate_1, candidate_2, dataset, w1, w2)

    return out[:B] if Bp != B else out


if __name__ == "__main__":
    key = jax.random.PRNGKey(0)
    k1, k2, k3, kw = jax.random.split(key, 4)

    B = 8          # batch of candidate pairs
    d_cand = 32    # candidate embedding dim
    d_data = 32    # dataset embedding dim
    in_dim = d_cand + d_data

    candidate_1 = jax.random.normal(k1, (B, d_cand), dtype=jnp.float32)
    candidate_2 = jax.random.normal(k2, (B, d_cand), dtype=jnp.float32)
    dataset = jax.random.normal(k3, (B, d_data), dtype=jnp.float32)
    # Deterministic synthetic weight for nn.Linear(in_dim, 1, bias=False).
    weight = jax.random.uniform(
        kw, (1, in_dim), dtype=jnp.float32,
        minval=-(in_dim ** -0.5), maxval=in_dim ** -0.5)

    score = fusion_direct_ranker(candidate_1, candidate_2, dataset, weight)
    score = jax.block_until_ready(score)

    # Pure-JAX reference check (same semantics as the PyTorch module).
    fused = jnp.concatenate([candidate_1 - candidate_2, dataset], axis=1)
    ref = jnp.tanh((fused @ weight.T) / 2.0)
    assert score.shape == (B, 1)
    assert jnp.allclose(score, ref, atol=1e-5, rtol=1e-5)

    print("KERNEL_OK")
</pallas_src>

<mosaic_0001>
module attributes {stable_mosaic.version = 11 : i64} {
  func.func @_ranker_kernel(%arg0: i32, %arg1: memref<8x32xf32, #tpu.memory_space<vmem>>, %arg2: memref<8x32xf32, #tpu.memory_space<vmem>>, %arg3: memref<8x32xf32, #tpu.memory_space<vmem>>, %arg4: memref<1x32xf32, #tpu.memory_space<vmem>>, %arg5: memref<1x32xf32, #tpu.memory_space<vmem>>, %arg6: memref<8x1xf32, #tpu.memory_space<vmem>>) attributes {dimension_semantics = [#tpu.dimension_semantics<parallel>], iteration_bounds = array<i64: 1>, scalar_prefetch = 0 : i64, scratch_operands = 0 : i64, tpu.core_type = #tpu.core_type<tc>, window_params = [{transform_indices = @transform_0, window_bounds = array<i64: 8, 32>}, {transform_indices = @transform_1, window_bounds = array<i64: 8, 32>}, {transform_indices = @transform_2, window_bounds = array<i64: 8, 32>}, {pipeline_mode = #tpu.pipeline_mode<synchronous>, transform_indices = @transform_3, window_bounds = array<i64: 1, 32>}, {pipeline_mode = #tpu.pipeline_mode<synchronous>, transform_indices = @transform_4, window_bounds = array<i64: 1, 32>}, {transform_indices = @transform_5, window_bounds = array<i64: 8, 1>}]} {
    %c0 = arith.constant 0 : index
    %c0_0 = arith.constant 0 : index
    %0 = vector.load %arg1[%c0, %c0_0] : memref<8x32xf32, #tpu.memory_space<vmem>>, vector<8x32xf32>
    %c0_1 = arith.constant 0 : index
    %c0_2 = arith.constant 0 : index
    %1 = vector.load %arg2[%c0_1, %c0_2] : memref<8x32xf32, #tpu.memory_space<vmem>>, vector<8x32xf32>
    %2 = arith.subf %0, %1 : vector<8x32xf32>
    %c0_3 = arith.constant 0 : index
    %c0_4 = arith.constant 0 : index
    %3 = vector.load %arg3[%c0_3, %c0_4] : memref<8x32xf32, #tpu.memory_space<vmem>>, vector<8x32xf32>
    %c0_5 = arith.constant 0 : index
    %c0_6 = arith.constant 0 : index
    %4 = vector.load %arg4[%c0_5, %c0_6] : memref<1x32xf32, #tpu.memory_space<vmem>>, vector<1x32xf32>
    %c0_7 = arith.constant 0 : index
    %c0_8 = arith.constant 0 : index
    %5 = vector.load %arg5[%c0_7, %c0_8] : memref<1x32xf32, #tpu.memory_space<vmem>>, vector<1x32xf32>
    %6 = vector.broadcast %4 : vector<1x32xf32> to vector<8x32xf32>
    %7 = arith.mulf %2, %6 : vector<8x32xf32>
    %cst = arith.constant dense<0.000000e+00> : vector<8xf32>
    %8 = vector.multi_reduction <add>, %7, %cst [1] : vector<8x32xf32> to vector<8xf32>
    %9 = vector.shape_cast %8 : vector<8xf32> to vector<8x1xf32>
    %10 = vector.broadcast %5 : vector<1x32xf32> to vector<8x32xf32>
    %11 = arith.mulf %3, %10 : vector<8x32xf32>
    %cst_9 = arith.constant dense<0.000000e+00> : vector<8xf32>
    %12 = vector.multi_reduction <add>, %11, %cst_9 [1] : vector<8x32xf32> to vector<8xf32>
    %13 = vector.shape_cast %12 : vector<8xf32> to vector<8x1xf32>
    %14 = arith.addf %9, %13 : vector<8x1xf32>
    %cst_10 = arith.constant 5.000000e-01 : f32
    %15 = vector.broadcast %cst_10 : f32 to vector<8x1xf32>
    %16 = arith.mulf %14, %15 : vector<8x1xf32>
    %17 = math.tanh %16 : vector<8x1xf32>
    %c0_11 = arith.constant 0 : index
    %c0_12 = arith.constant 0 : index
    %18 = vector.load %arg6[%c0_11, %c0_12] : memref<8x1xf32, #tpu.memory_space<vmem>>, vector<8x1xf32>
    tpu.vector_store %arg6[%c0_11, %c0_12], %17 {strides = array<i32>} : memref<8x1xf32, #tpu.memory_space<vmem>>, vector<8x1xf32>,
    return
  }
  func.func @transform_0(%arg0: i32) -> (i32, i32) {
    %c0_i32 = arith.constant 0 : i32
    %c0_i32_0 = arith.constant 0 : i32
    return %arg0, %c0_i32 : i32, i32
  }
  func.func @transform_1(%arg0: i32) -> (i32, i32) {
    %c0_i32 = arith.constant 0 : i32
    %c0_i32_0 = arith.constant 0 : i32
    return %arg0, %c0_i32 : i32, i32
  }
  func.func @transform_2(%arg0: i32) -> (i32, i32) {
    %c0_i32 = arith.constant 0 : i32
    %c0_i32_0 = arith.constant 0 : i32
    return %arg0, %c0_i32 : i32, i32
  }
  func.func @transform_3(%arg0: i32) -> (i32, i32) {
    %c0_i32 = arith.constant 0 : i32
    %c0_i32_0 = arith.constant 0 : i32
    %c0_i32_1 = arith.constant 0 : i32
    return %c0_i32, %c0_i32_0 : i32, i32
  }
  func.func @transform_4(%arg0: i32) -> (i32, i32) {
    %c0_i32 = arith.constant 0 : i32
    %c0_i32_0 = arith.constant 0 : i32
    %c0_i32_1 = arith.constant 0 : i32
    return %c0_i32, %c0_i32_0 : i32, i32
  }
  func.func @transform_5(%arg0: i32) -> (i32, i32) {
    %c0_i32 = arith.constant 0 : i32
    %c0_i32_0 = arith.constant 0 : i32
    return %arg0, %c0_i32 : i32, i32
  }
}

</mosaic_0001>

<bundles_post_ra>
// kernel: tpu_custom_call.1
= control target key start
LH: loop header
LB: loop body
LE: loop exit
PB: predicated region body
PF: predicated region fallthrough
CT: control target
= control target key end

     0   :  { %10 = vsyncpa [#allocation3], 0  ;;  %s248_s0 = inlined_call_operand.hbm [shape: f32[8,32], index: 0, kind: input, shape index: {}]   ;;  %s249_s1 = inlined_call_operand.hbm [shape: f32[8,32], index: 1, kind: input, shape index: {}]   ;;  %s250_s2 = inlined_call_operand.hbm [shape: f32[8,32], index: 2, kind: input, shape index: {}]   ;;  %s251_s3 = inlined_call_operand.vmem [shape: f32[1,32], index: 3, kind: input, shape index: {}]   ;;  %s252_s4 = inlined_call_operand.vmem [shape: f32[1,32], index: 4, kind: input, shape index: {}]   ;;  %s253_s5 = inlined_call_operand.vmem [shape: f32[8,1], index: 5, kind: output, shape index: {}]  }
   0x1   :  { %11 = vsyncpa [#allocation5], 0  ;;  %s170_s18 = smov [#allocation4]   ;;  %s171_s20 = smov [#allocation2]  }
   0x2   :  { %s28_s19 = sshll.u32 %s170_s18, 4  ;;  %s18_s21 = sshll.u32 %s171_s20, 4  ;;  %s29_s19 = int_to_ptr.vmem [resolvable:$true] %s28_s19  ;;  %s19_s21 = int_to_ptr.vmem [resolvable:$true] %s18_s21 }
   0x3   :  { %s100_s24 = scalar_lea.hbm %s249_s1, 128 }
   0x4   :  { %p101_p0 = scmp.ne.s32.totalorder %s249_s1, %s100_s24  ;;  %p104_p1 = scmp.lt.u32.totalorder %s100_s24, %s249_s1 }
   0x6   :  { %p106_p2 = pnand %p104_p1, %p101_p0 }
   0x8   :  { %109 = shalt.err (!%p106_p2)
}
   0x9   :  { %s110_s29 = scalar_lea.vmem %s29_s19, 128  ;;  %p115_p4 = scmp.lt.s32.totalorder %s29_s19, %s29_s19 }
   0xa   :  { %p111_p3 = scmp.ne.s32.totalorder %s29_s19, %s110_s29  ;;  %p116_p5 = scmp.lt.s32.totalorder %s110_s29, %s110_s29 }
   0xc   :  { %p117_p6 = por %p116_p5, %p115_p4 }
   0xe   :  { %p118_p7 = pnand %p117_p6, %p111_p3 }
  0x10   :  { %121 = shalt.err (!%p118_p7)
}
  0x11   :  { %31 = dma.hbm_to_vmem [thread:$0]  %s249_s1, 128, %s29_s19, [#allocation5]  }
  0x12   :  { %s122_s9 = scalar_lea.hbm %s248_s0, 128 }
  0x13   :  { %p123_p8 = scmp.ne.s32.totalorder %s248_s0, %s122_s9  ;;  %p126_p9 = scmp.lt.u32.totalorder %s122_s9, %s248_s0 }
  0x15   :  { %p128_p10 = pnand %p126_p9, %p123_p8 }
  0x17   :  { %131 = shalt.err (!%p128_p10)
}
  0x18   :  { %s132_s14 = scalar_lea.vmem %s19_s21, 128  ;;  %p137_p12 = scmp.lt.s32.totalorder %s19_s21, %s19_s21 }
  0x19   :  { %p133_p11 = scmp.ne.s32.totalorder %s19_s21, %s132_s14  ;;  %p138_p13 = scmp.lt.s32.totalorder %s132_s14, %s132_s14 }
  0x1b   :  { %p139_p0 = por %p138_p13, %p137_p12 }
  0x1d   :  { %p140_p1 = pnand %p139_p0, %p133_p11 }
  0x1f   :  { %143 = shalt.err (!%p140_p1)
}
  0x20   :  { %21 = dma.hbm_to_vmem [thread:$0]  %s248_s0, 128, %s19_s21, [#allocation3]  }
  0x21   :  { %s172_s16 = smov [#allocation6]   ;;  %s144_s20 = scalar_lea.hbm %s250_s2, 128 }
  0x22   :  { %s38_s17 = sshll.u32 %s172_s16, 4  ;;  %p145_p2 = scmp.ne.s32.totalorder %s250_s2, %s144_s20  ;;  %s39_s17 = int_to_ptr.vmem [resolvable:$true] %s38_s17 }
  0x23   :  { %p148_p3 = scmp.lt.u32.totalorder %s144_s20, %s250_s2 }
  0x25   :  { %p150_p4 = pnand %p148_p3, %p145_p2 }
  0x27   :  { %153 = shalt.err (!%p150_p4)
}
  0x28   :  { %s154_s26 = scalar_lea.vmem %s39_s17, 128  ;;  %p159_p6 = scmp.lt.s32.totalorder %s39_s17, %s39_s17 }
  0x29   :  { %p155_p5 = scmp.ne.s32.totalorder %s39_s17, %s154_s26  ;;  %p160_p7 = scmp.lt.s32.totalorder %s154_s26, %s154_s26 }
  0x2b   :  { %p161_p8 = por %p160_p7, %p159_p6 }
  0x2d   :  { %p162_p9 = pnand %p161_p8, %p155_p5 }
  0x2f   :  { %165 = shalt.err (!%p162_p9)
}
  0x30   :  { %41 = dma.hbm_to_vmem [thread:$0]  %s250_s2, 128, %s39_s17, [#allocation5]  }
  0x31   :  { %166 = dma.done.wait [#allocation3], 128  }
  0x32   :  { %167 = vsyncadd [#allocation3], 4294967168 }
  0x33   :  { %168 = dma.done.wait [#allocation5], 256  }
  0x34   :  { %169 = vsyncadd [#allocation5], 4294967040  ;;  %v55_v0 = vld [vmem:[#allocation2] sm:$0xff]  ;;  %v56_v1 = vld [vmem:[#allocation4] sm:$0xff]  ;;  %vm68_vm0 = vcmask 261120   ;;  %vm85_vm1 = vcmask 7168  }
  0x35   :  { %v93_v2 = vld [vmem:[%s251_s3] ss:$0 sm:$0xff]  ;;  %v57_v3 = vsub.f32 %v55_v0, %v56_v1  ;;  %v58_v4 = vld [vmem:[#allocation6] sm:$0xff] }
  0x36   :  { %v94_v5 = vld [vmem:[%s252_s4] ss:$0 sm:$0xff] }
  0x37   :  { %v67_v6 = vmul.f32 %v93_v2, %v57_v3  ;;  %v78_v7 = vmul.f32 %v94_v5, %v58_v4 }
  0x39   :  { %v69_v8 = vsel %vm68_vm0, %v67_v6, 0.0  ;;  %v79_v9 = vsel %vm68_vm0, %v78_v7, 0.0 }
  0x3a   :  { %70 = vadd.xlane.f32.xlu0 %v69_v8 }
  0x3e   :  { %80 = vadd.xlane.f32.xlu0 %v79_v9 }
  0xc7   :  { %v71_v10 = vpop.xlane.xlu0 %70 }
  0xcb   :  { %v81_v11 = vpop.xlane.xlu0 %80 }
  0xcc   :  { %v82_v12 = vadd.f32 %v81_v11, %v71_v10 }
  0xce   :  { %v83_v13 = vmul.f32 0.5, %v82_v12 }
  0xd0   :  { %98 = vtanh.f32 %v83_v13 }
  0xda   :  { %v99_v14 = vpop.eup %98 }
  0xdb   :  { %86 = vst.msk [vmem:[%s253_s5] sm:$0xff] %vm85_vm1, %v99_v14 }
  0xdc   :  { %91 = vsyncpa [#allocation3], 1 }
  0xdd   :  { %92 = vsyncpa [#allocation5], 1 }

</bundles_post_ra>
